<compile_context>
chip_gen: v5e
topology: v5e:2x2
jax: 0.10.0
libtpu: 0.0.40
codegen_flags: <defaults>
</compile_context>

<pallas_src>
import functools

import numpy as np
import jax
import jax.numpy as jnp
from jax import lax
from jax.experimental import pallas as pl
from jax.experimental.pallas import tpu as pltpu


# ----------------------------------------------------------------------------
# VMEM budget & tile sizing helpers
# ----------------------------------------------------------------------------
def _round_up(a, b):
    return -(-a // b) * b


def _vmem_budget_bytes():
    cap = None
    try:
        info = pltpu.get_tpu_info()
        cap = int(getattr(info, "vmem_capacity_bytes", 0)) or None
    except Exception:
        cap = None
    if cap is None:
        cap = 64 * 1024 * 1024  # conservative fallback, safe on every chip
    return int(max(32 * 1024 * 1024, min(64 * 1024 * 1024, int(cap * 0.7))))


def _conv_tile_sp(HWo, Wo, C_in, C_out, K, s, itemsize, budget, tile_target):
    """Largest multiple-of-128 flat-pixel tile whose per-step footprint fits the budget."""
    dh_max = (K - 1) // s
    ndw = dh_max + 1
    halo = dh_max * Wo
    KKC = K * K * C_in
    hi = max(128, (min(tile_target, _round_up(HWo, 128)) // 128) * 128)
    t = hi
    while t > 128:
        need = (2 * ndw * s * s * C_in * (t + halo) * itemsize   # input tile (double-buffered)
                + 2 * C_out * t * 4                              # output tile (double-buffered)
                + KKC * t * itemsize                             # patch slab scratch
                + (KKC + 2 * C_out) * t * 4)                     # loaded slab + f32 acc slack
        if need <= budget * 0.7:
            break
        t -= 128
    return t


def _dcn_tile_sp(HWo, C_in, RLp, CL, C_out, K, itemsize, budget, tile_target):
    """Budget-aware DCN tile: accounts for resident image, per-tap u temp, slab, io blocks."""
    KK = K * K
    KKC = KK * C_in
    fixed = 2 * C_in * RLp * CL * itemsize + 2 * C_out * KKC * itemsize
    hi = max(128, (min(tile_target, _round_up(HWo, 128)) // 128) * 128)
    t = hi
    while t > 128:
        per = (2 * (3 * KK + 2) * t * 4                          # offset/mask/base blocks
               + 2 * C_out * t * 4                               # output tile
               + KKC * t * itemsize                              # slab scratch
               + (2 * C_in * RLp + 2 * CL + RLp + KK + C_out + 8) * t * 4)  # temporaries
        if fixed + per <= budget * 0.7:
            break
        t -= 128
    return t


# ----------------------------------------------------------------------------
# Pallas kernel 1: regular conv (static per-tap bulk copies + one stacked matmul)
# ----------------------------------------------------------------------------
def _conv_kernel(x_ref, w_ref, b_ref, o_ref, slab_ref, *, K, s, Wo, C_in, has_bias):
    # x_ref   : [1, 1, ndw*s*s, C_in, tile_sp + halo]  (dw-stacked, stride-phase, flat rows)
    # slab_ref: [K*K*C_in, tile_sp] patch slab (compute dtype)
    tile_sp = slab_ref.shape[1]
    for k in range(K * K):
        kh, kw = k // K, k % K
        ph = (kh % s) * s + (kw % s)        # stride phase holding this tap
        dh, dw = kh // s, kw // s           # row shift inside the halo / column-stack index
        g = dw * (s * s) + ph
        slab_ref[k * C_in:(k + 1) * C_in, :] = (
            x_ref[0, 0, g, :, dh * Wo: dh * Wo + tile_sp])
    acc = jnp.dot(w_ref[...], slab_ref[...], preferred_element_type=jnp.float32)
    if has_bias:
        acc = acc + b_ref[...]
    o_ref[0] = acc.astype(o_ref.dtype)


def conv2d_pallas(x, weight, bias, stride, pad, *,
                  compute_dtype=jnp.bfloat16, tile_target=2048):
    """Regular Conv2d (NCHW). weight: [Cout, Cin, K, K], bias: [Cout] or None."""
    N, C_in, H, W = x.shape
    C_out, _, K, _ = weight.shape
    s = stride
    Ho = (H + 2 * pad - K) // s + 1
    Wo = (W + 2 * pad - K) // s + 1
    HWo = Ho * Wo
    dh_max = (K - 1) // s
    ndw = dh_max + 1
    Hph, Wph = Ho + dh_max, Wo + dh_max
    Hs, Ws = Hph * s, Wph * s

    itemsize = jnp.dtype(compute_dtype).itemsize
    budget = _vmem_budget_bytes()
    tile_sp = _conv_tile_sp(HWo, Wo, C_in, C_out, K, s, itemsize, budget, tile_target)
    HWo_pad = _round_up(HWo, tile_sp)
    n_tiles = HWo_pad // tile_sp
    halo = dh_max * Wo
    tile_ext = tile_sp + halo

    # HBM-side relayout (once, ~2x the input, compute dtype): zero-pad, stride-phase
    # decompose, stack the (K-1)//s + 1 column shifts and flatten phase rows so every tap
    # of every flat output pixel is one contiguous, statically addressable lane run.
    pb = max(0, Hs - (H + pad))
    pr = max(0, Ws - (W + pad))
    xp = jnp.pad(x, ((0, 0), (0, 0), (pad, pb), (pad, pr)))[:, :, :Hs, :Ws]
    xp = xp.astype(compute_dtype)
    xph = xp.reshape(N, C_in, Hph, s, Wph, s).transpose(0, 3, 5, 1, 2, 4)
    xph = xph.reshape(N, s * s, C_in, Hph, Wph)
    xflat = jnp.stack([xph[..., d:d + Wo] for d in range(ndw)], axis=1)
    xflat = xflat.reshape(N, ndw * s * s, C_in, Hph * Wo)
    xflat = jnp.pad(xflat, ((0, 0), (0, 0), (0, 0), (0, HWo_pad + halo - Hph * Wo)))
    # overlapping (halo-extended) lane tiles so the kernel needs no dynamic lane slicing
    xtiles = jnp.stack([xflat[..., t * tile_sp: t * tile_sp + tile_ext]
                        for t in range(n_tiles)], axis=1)   # [N, T, ndw*s*s, C_in, tile_ext]

    # weights flattened tap-major / channel-minor to match the slab row order
    w2 = weight.transpose(0, 2, 3, 1).reshape(C_out, K * K * C_in).astype(compute_dtype)
    has_bias = bias is not None
    b_col = (bias.astype(jnp.float32) if has_bias
             else jnp.zeros((C_out,), jnp.float32)).reshape(C_out, 1)

    kernel = functools.partial(_conv_kernel, K=K, s=s, Wo=Wo, C_in=C_in, has_bias=has_bias)
    out_flat = pl.pallas_call(
        kernel,
        out_shape=jax.ShapeDtypeStruct((N, C_out, HWo_pad), jnp.float32),
        grid=(N, n_tiles),
        in_specs=[
            pl.BlockSpec((1, 1, ndw * s * s, C_in, tile_ext), lambda n, t: (n, t, 0, 0, 0)),
            pl.BlockSpec((C_out, K * K * C_in), lambda n, t: (0, 0)),
            pl.BlockSpec((C_out, 1), lambda n, t: (0, 0)),
        ],
        out_specs=pl.BlockSpec((1, C_out, tile_sp), lambda n, t: (n, 0, t)),
        scratch_shapes=[pltpu.VMEM((K * K * C_in, tile_sp), compute_dtype)],
        compiler_params=pltpu.CompilerParams(
            dimension_semantics=("parallel", "parallel"),
            vmem_limit_bytes=budget),
    )(xtiles, w2, b_col)

    return out_flat[:, :, :HWo].reshape(N, C_out, Ho, Wo)


# ----------------------------------------------------------------------------
# Pallas kernel 2: deformable conv v2 (separable bilinear tents + stacked matmul)
# ----------------------------------------------------------------------------
def _dcn_kernel(x_ref, off_ref, msk_ref, base_ref, w_ref, b_ref, o_ref, slab_ref, *,
                K, C_in, CL, RLp, contract_w, compute_dtype):
    tile_sp = slab_ref.shape[1]
    x2 = x_ref[0]                                   # [C_in*RLp, CL], compute dtype (resident)
    off = off_ref[0]                                # [2*K*K, tile] f32 (dy, dx per tap)
    by = base_ref[0:1, :]                           # [1, tile] base y of output pixels
    bx = base_ref[1:2, :]                           # [1, tile] base x of output pixels

    # in-kernel pixel coordinates for both spatial axes (no [HW,1] side inputs)
    ic = lax.broadcasted_iota(jnp.int32, (CL, tile_sp), 0).astype(jnp.float32)
    ir = lax.broadcasted_iota(jnp.int32, (RLp, tile_sp), 0).astype(jnp.float32)

    # sigmoid hoisted over the whole mask slab (one EUP pass)
    msig = 1.0 / (1.0 + jnp.exp(-msk_ref[0]))       # [K*K, tile]

    for k in range(K * K):
        kh, kw = k // K, k % K
        py = by + float(kh) + off[2 * k:2 * k + 1, :]
        px = bx + float(kw) + off[2 * k + 1:2 * k + 2, :]
        # larger spatial axis -> MXU contraction, smaller -> VPU reduce
        pc, pr = (px, py) if contract_w else (py, px)
        tc = jnp.maximum(0.0, 1.0 - jnp.abs(ic - pc))               # [CL,  tile] tent (MXU)
        tr = jnp.maximum(0.0, 1.0 - jnp.abs(ir - pr))               # [RLp, tile] tent (VPU)
        # separable bilinear sampling (zero outside == zero padding)
        u = jnp.dot(x2, tc.astype(compute_dtype),
                    preferred_element_type=jnp.float32)             # [C_in*RLp, tile]
        samp = jnp.sum(u.reshape(C_in, RLp, tile_sp) * tr[None, :, :], axis=1)  # [C_in, tile]
        slab_ref[k * C_in:(k + 1) * C_in, :] = (samp * msig[k:k + 1, :]).astype(slab_ref.dtype)

    # single stacked weight matmul over K*K*C_in
    acc = jnp.dot(w_ref[...], slab_ref[...], preferred_element_type=jnp.float32)
    o_ref[0] = (acc + b_ref[...]).astype(o_ref.dtype)


def deform_conv2d_pallas(x, offset, mask_raw, weight, bias, stride, pad, *,
                         compute_dtype=jnp.bfloat16, tile_target=1024):
    """DeformConv2d v2 (NCHW). offset: [N, 2*K*K, Ho, Wo]; mask_raw is pre-sigmoid."""
    N, C_in, H, W = x.shape
    C_out, _, K, _ = weight.shape
    Ho = (H + 2 * pad - K) // stride + 1
    Wo = (W + 2 * pad - K) // stride + 1
    HWo = Ho * Wo
    KK = K * K

    # larger spatial axis is contracted on the MXU, the smaller reduced on the VPU;
    # reduced axis padded to a multiple of 8 so the sublane split in-kernel is free.
    contract_w = W >= H
    if contract_w:
        RL, CL = H, W
        RLp = _round_up(RL, 8)
        xg = jnp.pad(x, ((0, 0), (0, 0), (0, RLp - RL), (0, 0)))
        x2 = xg.reshape(N, C_in * RLp, W).astype(compute_dtype)
    else:
        RL, CL = W, H
        RLp = _round_up(RL, 8)
        xg = jnp.pad(x, ((0, 0), (0, 0), (0, 0), (0, RLp - RL)))
        x2 = xg.transpose(0, 1, 3, 2).reshape(N, C_in * RLp, H).astype(compute_dtype)

    itemsize = jnp.dtype(compute_dtype).itemsize
    budget = _vmem_budget_bytes()
    tile_sp = _dcn_tile_sp(HWo, C_in, RLp, CL, C_out, K, itemsize, budget, tile_target)
    HWo_pad = _round_up(HWo, tile_sp)
    n_tiles = HWo_pad // tile_sp
    lane_pad = ((0, 0), (0, 0), (0, HWo_pad - HWo))

    # coordinates / offsets stay f32 (only tent weights are cast for the MXU)
    off = jnp.pad(offset.reshape(N, 2 * KK, HWo).astype(jnp.float32), lane_pad)
    msk = jnp.pad(mask_raw.reshape(N, KK, HWo).astype(jnp.float32), lane_pad)
    oy = jnp.arange(Ho, dtype=jnp.float32) * stride - pad
    ox = jnp.arange(Wo, dtype=jnp.float32) * stride - pad
    base = jnp.stack([jnp.repeat(oy, Wo), jnp.tile(ox, Ho)], axis=0)           # [2, HWo]
    base = jnp.pad(base, ((0, 0), (0, HWo_pad - HWo)))

    w2 = weight.transpose(0, 2, 3, 1).reshape(C_out, KK * C_in).astype(compute_dtype)
    b_col = bias.astype(jnp.float32).reshape(C_out, 1)

    kernel = functools.partial(_dcn_kernel, K=K, C_in=C_in, CL=CL, RLp=RLp,
                               contract_w=contract_w, compute_dtype=compute_dtype)
    out_flat = pl.pallas_call(
        kernel,
        out_shape=jax.ShapeDtypeStruct((N, C_out, HWo_pad), jnp.float32),
        grid=(N, n_tiles),
        in_specs=[
            pl.BlockSpec((1, C_in * RLp, CL), lambda n, t: (n, 0, 0)),
            pl.BlockSpec((1, 2 * KK, tile_sp), lambda n, t: (n, 0, t)),
            pl.BlockSpec((1, KK, tile_sp), lambda n, t: (n, 0, t)),
            pl.BlockSpec((2, tile_sp), lambda n, t: (0, t)),
            pl.BlockSpec((C_out, KK * C_in), lambda n, t: (0, 0)),
            pl.BlockSpec((C_out, 1), lambda n, t: (0, 0)),
        ],
        out_specs=pl.BlockSpec((1, C_out, tile_sp), lambda n, t: (n, 0, t)),
        scratch_shapes=[pltpu.VMEM((KK * C_in, tile_sp), compute_dtype)],
        compiler_params=pltpu.CompilerParams(
            dimension_semantics=("parallel", "parallel"),
            vmem_limit_bytes=budget),
    )(x2, off, msk, base, w2, b_col)

    return out_flat[:, :, :HWo].reshape(N, C_out, Ho, Wo)


# ----------------------------------------------------------------------------
# Pure-JAX reference for the deformable conv (exercises non-zero offsets/masks)
# ----------------------------------------------------------------------------
def _dcn_reference(x, offset, mask, weight, bias, stride, pad):
    """Dense bilinear 'tent' formulation (zero padding), torchvision offset layout."""
    N, C_in, H, W = x.shape
    C_out, _, K, _ = weight.shape
    Ho = (H + 2 * pad - K) // stride + 1
    Wo = (W + 2 * pad - K) // stride + 1
    iy = jnp.arange(H, dtype=jnp.float32)
    ix = jnp.arange(W, dtype=jnp.float32)
    oy = jnp.arange(Ho, dtype=jnp.float32) * stride - pad
    ox = jnp.arange(Wo, dtype=jnp.float32) * stride - pad

    def one(xn, offn, mskn):
        acc = jnp.zeros((C_out, Ho, Wo), jnp.float32)
        for k in range(K * K):
            kh, kw = k // K, k % K
            py = oy[:, None] + kh + offn[2 * k]
            px = ox[None, :] + kw + offn[2 * k + 1]
            ty = jnp.maximum(0.0, 1.0 - jnp.abs(iy[:, None, None] - py[None]))
            tx = jnp.maximum(0.0, 1.0 - jnp.abs(ix[:, None, None] - px[None]))
            samp = jnp.einsum('chw,hij,wij->cij', xn, ty, tx,
                              precision=lax.Precision.HIGHEST)
            acc = acc + jnp.einsum('oc,cij->oij', weight[:, :, kh, kw],
                                   samp * mskn[k][None],
                                   precision=lax.Precision.HIGHEST)
        return acc + bias[:, None, None]

    return jax.vmap(one)(x.astype(jnp.float32), offset, mask)


# ----------------------------------------------------------------------------
# ConvNormLayer forward (both branches; forward applies no norm, as in the module)
# ----------------------------------------------------------------------------
class ConvNormLayerPallas:
    def __init__(self, ch_in, ch_out, filter_size, stride, dcn_v2=False,
                 compute_dtype=jnp.bfloat16, key=None):
        self.ch_in, self.ch_out = ch_in, ch_out
        self.k, self.stride = filter_size, stride
        self.pad = (filter_size - 1) // 2
        self.dcn_v2 = dcn_v2
        self.compute_dtype = compute_dtype
        key = jax.random.PRNGKey(0) if key is None else key
        k1, k2 = jax.random.split(key)

        # xavier_normal_ on the conv weight
        fan_in = ch_in * filter_size * filter_size
        fan_out = ch_out * filter_size * filter_size
        std = float(np.sqrt(2.0 / (fan_in + fan_out)))
        self.conv_w = std * jax.random.normal(
            k1, (ch_out, ch_in, filter_size, filter_size), dtype=jnp.float32)

        if dcn_v2:
            self.offset_channel = 2 * filter_size ** 2
            self.mask_channel = filter_size ** 2
            # conv_offset: weight and bias initialized to 0.0 (per module __init__)
            self.off_w = jnp.zeros(
                (3 * filter_size ** 2, ch_in, filter_size, filter_size), jnp.float32)
            self.off_b = jnp.zeros((3 * filter_size ** 2,), jnp.float32)
            # DeformConv2d bias (deterministic uniform init)
            bound = 1.0 / np.sqrt(fan_in)
            self.conv_b = jax.random.uniform(
                k2, (ch_out,), jnp.float32, minval=-bound, maxval=bound)
        else:
            self.conv_b = None

    def __call__(self, x):
        if not self.dcn_v2:
            return conv2d_pallas(x, self.conv_w, None, self.stride, self.pad,
                                 compute_dtype=self.compute_dtype)
        offset_mask = conv2d_pallas(x, self.off_w, self.off_b, self.stride, self.pad,
                                    compute_dtype=self.compute_dtype)
        offset = offset_mask[:, :self.offset_channel]
        mask_raw = offset_mask[:, self.offset_channel:]   # sigmoid applied in-kernel
        return deform_conv2d_pallas(x, offset, mask_raw, self.conv_w, self.conv_b,
                                    self.stride, self.pad,
                                    compute_dtype=self.compute_dtype)


if __name__ == "__main__":
    ch_in, ch_out, filter_size, stride = 4, 8, 3, 2
    N, H, W = 2, 16, 16
    pad = (filter_size - 1) // 2

    key = jax.random.PRNGKey(0)
    kx, kp, ko, km, kx2 = jax.random.split(key, 5)
    x = jax.random.normal(kx, (N, ch_in, H, W), dtype=jnp.float32)

    def conv_ref(xa, wa, dt):
        return lax.conv_general_dilated(
            xa.astype(dt), wa.astype(dt), window_strides=(stride, stride),
            padding=((pad, pad), (pad, pad)),
            dimension_numbers=("NCHW", "OIHW", "NCHW"),
            preferred_element_type=jnp.float32,
            precision=lax.Precision.HIGHEST)

    # ---- dcn_v2=False branch (plain conv), bf16 compute (default) ----
    layer_plain = ConvNormLayerPallas(ch_in, ch_out, filter_size, stride,
                                      dcn_v2=False, key=kp)
    out_plain = jax.block_until_ready(layer_plain(x))
    assert out_plain.shape == (N, ch_out, 8, 8)
    ref_plain16 = conv_ref(x, layer_plain.conv_w, jnp.bfloat16)
    assert np.allclose(np.asarray(out_plain), np.asarray(ref_plain16), rtol=2e-3, atol=2e-3)

    # ---- plain conv, f32 compute path (strict parity) ----
    out_plain32 = jax.block_until_ready(
        conv2d_pallas(x, layer_plain.conv_w, None, stride, pad, compute_dtype=jnp.float32))
    ref_plain32 = conv_ref(x, layer_plain.conv_w, jnp.float32)
    assert np.allclose(np.asarray(out_plain32), np.asarray(ref_plain32), rtol=2e-3, atol=2e-3)

    # ---- dcn_v2=True branch (module semantics: zero-init conv_offset) ----
    layer_dcn = ConvNormLayerPallas(ch_in, ch_out, filter_size, stride,
                                    dcn_v2=True, key=kp)
    out_dcn = jax.block_until_ready(layer_dcn(x))
    assert out_dcn.shape == (N, ch_out, 8, 8)
    # with zero-initialized conv_offset: offsets = 0, mask = sigmoid(0) = 0.5
    ref_dcn = 0.5 * conv_ref(x, layer_dcn.conv_w, jnp.bfloat16) \
        + layer_dcn.conv_b[None, :, None, None]
    assert np.allclose(np.asarray(out_dcn), np.asarray(ref_dcn), rtol=2e-3, atol=2e-3)

    # ---- deformable sampling with non-zero offsets / non-trivial masks ----
    Ho = (H + 2 * pad - filter_size) // stride + 1
    Wo = (W + 2 * pad - filter_size) // stride + 1
    KK = filter_size * filter_size
    offs = 2.0 * jax.random.normal(ko, (N, 2 * KK, Ho, Wo), dtype=jnp.float32)
    mask_logits = jax.random.normal(km, (N, KK, Ho, Wo), dtype=jnp.float32)
    ref_off = _dcn_reference(x, offs, jax.nn.sigmoid(mask_logits),
                             layer_dcn.conv_w, layer_dcn.conv_b, stride, pad)
    out_off32 = jax.block_until_ready(
        deform_conv2d_pallas(x, offs, mask_logits, layer_dcn.conv_w, layer_dcn.conv_b,
                             stride, pad, compute_dtype=jnp.float32))
    assert np.allclose(np.asarray(out_off32), np.asarray(ref_off), rtol=2e-3, atol=2e-3)
    out_off16 = jax.block_until_ready(
        deform_conv2d_pallas(x, offs, mask_logits, layer_dcn.conv_w, layer_dcn.conv_b,
                             stride, pad))
    assert np.allclose(np.asarray(out_off16), np.asarray(ref_off), rtol=2e-2, atol=2e-2)

    # ---- larger / non-square shapes: multi-tile lane-dense path, halo reads,
    #      non-row-aligned flat tiles, H-contraction branch, reduced-axis padding ----
    H2, W2 = 32, 24
    x2in = jax.random.normal(kx2, (N, ch_in, H2, W2), dtype=jnp.float32)
    w2c = 0.1 * jax.random.normal(kp, (ch_out, ch_in, filter_size, filter_size),
                                  dtype=jnp.float32)
    out_c = jax.block_until_ready(
        conv2d_pallas(x2in, w2c, None, stride, pad,
                      compute_dtype=jnp.float32, tile_target=128))
    ref_c = conv_ref(x2in, w2c, jnp.float32)
    assert np.allclose(np.asarray(out_c), np.asarray(ref_c), rtol=2e-3, atol=2e-3)

    H3, W3 = 32, 20
    x3 = jax.random.normal(kx2, (N, ch_in, H3, W3), dtype=jnp.float32)
    Ho3 = (H3 + 2 * pad - filter_size) // stride + 1
    Wo3 = (W3 + 2 * pad - filter_size) // stride + 1
    offs3 = 1.5 * jax.random.normal(ko, (N, 2 * KK, Ho3, Wo3), dtype=jnp.float32)
    mlog3 = jax.random.normal(km, (N, KK, Ho3, Wo3), dtype=jnp.float32)
    ref3 = _dcn_reference(x3, offs3, jax.nn.sigmoid(mlog3),
                          layer_dcn.conv_w, layer_dcn.conv_b, stride, pad)
    out3 = jax.block_until_ready(
        deform_conv2d_pallas(x3, offs3, mlog3, layer_dcn.conv_w, layer_dcn.conv_b,
                             stride, pad, compute_dtype=jnp.float32, tile_target=128))
    assert np.allclose(np.asarray(out3), np.asarray(ref3), rtol=2e-3, atol=2e-3)

    print("KERNEL_OK")
</pallas_src>

<mosaic_0001>
module attributes {stable_mosaic.version = 11 : i64} {
  func.func @_conv_kernel(%arg0: i32, %arg1: i32, %arg2: memref<1x1x8x4x136xbf16, #tpu.memory_space<vmem>>, %arg3: memref<8x36xbf16, #tpu.memory_space<vmem>>, %arg4: memref<8x1xf32, #tpu.memory_space<vmem>>, %arg5: memref<1x8x128xf32, #tpu.memory_space<vmem>>, %arg6: memref<36x128xbf16, #tpu.memory_space<vmem>>) attributes {dimension_semantics = [#tpu.dimension_semantics<parallel>, #tpu.dimension_semantics<parallel>], iteration_bounds = array<i64: 2, 1>, scalar_prefetch = 0 : i64, scratch_operands = 1 : i64, tpu.core_type = #tpu.core_type<tc>, window_params = [{transform_indices = @transform_0, window_bounds = array<i64: 1, 1, 8, 4, 136>}, {pipeline_mode = #tpu.pipeline_mode<synchronous>, transform_indices = @transform_1, window_bounds = array<i64: 8, 36>}, {pipeline_mode = #tpu.pipeline_mode<synchronous>, transform_indices = @transform_2, window_bounds = array<i64: 8, 1>}, {transform_indices = @transform_3, window_bounds = array<i64: 1, 8, 128>}]} {
    %c0 = arith.constant 0 : index
    %c0_0 = arith.constant 0 : index
    %c0_1 = arith.constant 0 : index
    %c0_2 = arith.constant 0 : index
    %c0_3 = arith.constant 0 : index
    %0 = vector.load %arg2[%c0, %c0_0, %c0_1, %c0_2, %c0_3] : memref<1x1x8x4x136xbf16, #tpu.memory_space<vmem>>, vector<1x1x1x4x128xbf16>
    %1 = vector.shape_cast %0 : vector<1x1x1x4x128xbf16> to vector<4x128xbf16>
    %c0_4 = arith.constant 0 : index
    %c0_5 = arith.constant 0 : index
    %2 = vector.load %arg6[%c0_4, %c0_5] : memref<36x128xbf16, #tpu.memory_space<vmem>>, vector<4x128xbf16>
    tpu.vector_store %arg6[%c0_4, %c0_5], %1 {strides = array<i32>} : memref<36x128xbf16, #tpu.memory_space<vmem>>, vector<4x128xbf16>,
    %c0_6 = arith.constant 0 : index
    %c0_7 = arith.constant 0 : index
    %c1 = arith.constant 1 : index
    %c0_8 = arith.constant 0 : index
    %c0_9 = arith.constant 0 : index
    %3 = vector.load %arg2[%c0_6, %c0_7, %c1, %c0_8, %c0_9] : memref<1x1x8x4x136xbf16, #tpu.memory_space<vmem>>, vector<1x1x1x4x128xbf16>
    %4 = vector.shape_cast %3 : vector<1x1x1x4x128xbf16> to vector<4x128xbf16>
    %c4 = arith.constant 4 : index
    %c0_10 = arith.constant 0 : index
    %5 = vector.load %arg6[%c4, %c0_10] : memref<36x128xbf16, #tpu.memory_space<vmem>>, vector<4x128xbf16>
    tpu.vector_store %arg6[%c4, %c0_10], %4 {strides = array<i32>} : memref<36x128xbf16, #tpu.memory_space<vmem>>, vector<4x128xbf16>,
    %c0_11 = arith.constant 0 : index
    %c0_12 = arith.constant 0 : index
    %c4_13 = arith.constant 4 : index
    %c0_14 = arith.constant 0 : index
    %c0_15 = arith.constant 0 : index
    %6 = vector.load %arg2[%c0_11, %c0_12, %c4_13, %c0_14, %c0_15] : memref<1x1x8x4x136xbf16, #tpu.memory_space<vmem>>, vector<1x1x1x4x128xbf16>
    %7 = vector.shape_cast %6 : vector<1x1x1x4x128xbf16> to vector<4x128xbf16>
    %c8 = arith.constant 8 : index
    %c0_16 = arith.constant 0 : index
    %8 = vector.load %arg6[%c8, %c0_16] : memref<36x128xbf16, #tpu.memory_space<vmem>>, vector<4x128xbf16>
    tpu.vector_store %arg6[%c8, %c0_16], %7 {strides = array<i32>} : memref<36x128xbf16, #tpu.memory_space<vmem>>, vector<4x128xbf16>,
    %c0_17 = arith.constant 0 : index
    %c0_18 = arith.constant 0 : index
    %c2 = arith.constant 2 : index
    %c0_19 = arith.constant 0 : index
    %c0_20 = arith.constant 0 : index
    %9 = vector.load %arg2[%c0_17, %c0_18, %c2, %c0_19, %c0_20] : memref<1x1x8x4x136xbf16, #tpu.memory_space<vmem>>, vector<1x1x1x4x128xbf16>
    %10 = vector.shape_cast %9 : vector<1x1x1x4x128xbf16> to vector<4x128xbf16>
    %c12 = arith.constant 12 : index
    %c0_21 = arith.constant 0 : index
    %11 = vector.load %arg6[%c12, %c0_21] : memref<36x128xbf16, #tpu.memory_space<vmem>>, vector<4x128xbf16>
    tpu.vector_store %arg6[%c12, %c0_21], %10 {strides = array<i32>} : memref<36x128xbf16, #tpu.memory_space<vmem>>, vector<4x128xbf16>,
    %c0_22 = arith.constant 0 : index
    %c0_23 = arith.constant 0 : index
    %c3 = arith.constant 3 : index
    %c0_24 = arith.constant 0 : index
    %c0_25 = arith.constant 0 : index
    %12 = vector.load %arg2[%c0_22, %c0_23, %c3, %c0_24, %c0_25] : memref<1x1x8x4x136xbf16, #tpu.memory_space<vmem>>, vector<1x1x1x4x128xbf16>
    %13 = vector.shape_cast %12 : vector<1x1x1x4x128xbf16> to vector<4x128xbf16>
    %c16 = arith.constant 16 : index
    %c0_26 = arith.constant 0 : index
    %14 = vector.load %arg6[%c16, %c0_26] : memref<36x128xbf16, #tpu.memory_space<vmem>>, vector<4x128xbf16>
    tpu.vector_store %arg6[%c16, %c0_26], %13 {strides = array<i32>} : memref<36x128xbf16, #tpu.memory_space<vmem>>, vector<4x128xbf16>,
    %c0_27 = arith.constant 0 : index
    %c0_28 = arith.constant 0 : index
    %c6 = arith.constant 6 : index
    %c0_29 = arith.constant 0 : index
    %c0_30 = arith.constant 0 : index
    %15 = vector.load %arg2[%c0_27, %c0_28, %c6, %c0_29, %c0_30] : memref<1x1x8x4x136xbf16, #tpu.memory_space<vmem>>, vector<1x1x1x4x128xbf16>
    %16 = vector.shape_cast %15 : vector<1x1x1x4x128xbf16> to vector<4x128xbf16>
    %c20 = arith.constant 20 : index
    %c0_31 = arith.constant 0 : index
    %17 = vector.load %arg6[%c20, %c0_31] : memref<36x128xbf16, #tpu.memory_space<vmem>>, vector<4x128xbf16>
    tpu.vector_store %arg6[%c20, %c0_31], %16 {strides = array<i32>} : memref<36x128xbf16, #tpu.memory_space<vmem>>, vector<4x128xbf16>,
    %c0_32 = arith.constant 0 : index
    %c0_33 = arith.constant 0 : index
    %c0_34 = arith.constant 0 : index
    %c0_35 = arith.constant 0 : index
    %c8_36 = arith.constant 8 : index
    %18 = vector.load %arg2[%c0_32, %c0_33, %c0_34, %c0_35, %c8_36] : memref<1x1x8x4x136xbf16, #tpu.memory_space<vmem>>, vector<1x1x1x4x128xbf16>
    %19 = vector.shape_cast %18 : vector<1x1x1x4x128xbf16> to vector<4x128xbf16>
    %c24 = arith.constant 24 : index
    %c0_37 = arith.constant 0 : index
    %20 = vector.load %arg6[%c24, %c0_37] : memref<36x128xbf16, #tpu.memory_space<vmem>>, vector<4x128xbf16>
    tpu.vector_store %arg6[%c24, %c0_37], %19 {strides = array<i32>} : memref<36x128xbf16, #tpu.memory_space<vmem>>, vector<4x128xbf16>,
    %c0_38 = arith.constant 0 : index
    %c0_39 = arith.constant 0 : index
    %c1_40 = arith.constant 1 : index
    %c0_41 = arith.constant 0 : index
    %c8_42 = arith.constant 8 : index
    %21 = vector.load %arg2[%c0_38, %c0_39, %c1_40, %c0_41, %c8_42] : memref<1x1x8x4x136xbf16, #tpu.memory_space<vmem>>, vector<1x1x1x4x128xbf16>
    %22 = vector.shape_cast %21 : vector<1x1x1x4x128xbf16> to vector<4x128xbf16>
    %c28 = arith.constant 28 : index
    %c0_43 = arith.constant 0 : index
    %23 = vector.load %arg6[%c28, %c0_43] : memref<36x128xbf16, #tpu.memory_space<vmem>>, vector<4x128xbf16>
    tpu.vector_store %arg6[%c28, %c0_43], %22 {strides = array<i32>} : memref<36x128xbf16, #tpu.memory_space<vmem>>, vector<4x128xbf16>,
    %c0_44 = arith.constant 0 : index
    %c0_45 = arith.constant 0 : index
    %c4_46 = arith.constant 4 : index
    %c0_47 = arith.constant 0 : index
    %c8_48 = arith.constant 8 : index
    %24 = vector.load %arg2[%c0_44, %c0_45, %c4_46, %c0_47, %c8_48] : memref<1x1x8x4x136xbf16, #tpu.memory_space<vmem>>, vector<1x1x1x4x128xbf16>
    %25 = vector.shape_cast %24 : vector<1x1x1x4x128xbf16> to vector<4x128xbf16>
    %c32 = arith.constant 32 : index
    %c0_49 = arith.constant 0 : index
    %26 = vector.load %arg6[%c32, %c0_49] : memref<36x128xbf16, #tpu.memory_space<vmem>>, vector<4x128xbf16>
    tpu.vector_store %arg6[%c32, %c0_49], %25 {strides = array<i32>} : memref<36x128xbf16, #tpu.memory_space<vmem>>, vector<4x128xbf16>,
    %c0_50 = arith.constant 0 : index
    %c0_51 = arith.constant 0 : index
    %27 = vector.load %arg3[%c0_50, %c0_51] : memref<8x36xbf16, #tpu.memory_space<vmem>>, vector<8x36xbf16>
    %c0_52 = arith.constant 0 : index
    %c0_53 = arith.constant 0 : index
    %28 = vector.load %arg6[%c0_52, %c0_53] : memref<36x128xbf16, #tpu.memory_space<vmem>>, vector<36x128xbf16>
    %cst = arith.constant dense<0.000000e+00> : vector<8x128xf32>
    %29 = tpu.matmul %27, %28, %cst {dimension_numbers = #tpu.dot_dimension_numbers<[1], [0], [0], [1], [0, 0, 1, 1], [], []>} : vector<8x36xbf16>, vector<36x128xbf16>, vector<8x128xf32> -> vector<8x128xf32>
    %c0_54 = arith.constant 0 : index
    %c0_55 = arith.constant 0 : index
    %c0_56 = arith.constant 0 : index
    %30 = vector.load %arg5[%c0_54, %c0_55, %c0_56] : memref<1x8x128xf32, #tpu.memory_space<vmem>>, vector<1x8x128xf32>
    %31 = vector.shape_cast %30 : vector<1x8x128xf32> to vector<8x128xf32>
    %32 = vector.shape_cast %29 : vector<8x128xf32> to vector<1x8x128xf32>
    tpu.vector_store %arg5[%c0_54, %c0_55, %c0_56], %32 {strides = array<i32>} : memref<1x8x128xf32, #tpu.memory_space<vmem>>, vector<1x8x128xf32>,
    return
  }
  func.func @transform_0(%arg0: i32, %arg1: i32) -> (i32, i32, i32, i32, i32) {
    %c0_i32 = arith.constant 0 : i32
    %c0_i32_0 = arith.constant 0 : i32
    %c0_i32_1 = arith.constant 0 : i32
    %c0_i32_2 = arith.constant 0 : i32
    return %arg0, %arg1, %c0_i32, %c0_i32_0, %c0_i32_1 : i32, i32, i32, i32, i32
  }
  func.func @transform_1(%arg0: i32, %arg1: i32) -> (i32, i32) {
    %c0_i32 = arith.constant 0 : i32
    %c0_i32_0 = arith.constant 0 : i32
    %c0_i32_1 = arith.constant 0 : i32
    return %c0_i32, %c0_i32_0 : i32, i32
  }
  func.func @transform_2(%arg0: i32, %arg1: i32) -> (i32, i32) {
    %c0_i32 = arith.constant 0 : i32
    %c0_i32_0 = arith.constant 0 : i32
    %c0_i32_1 = arith.constant 0 : i32
    return %c0_i32, %c0_i32_0 : i32, i32
  }
  func.func @transform_3(%arg0: i32, %arg1: i32) -> (i32, i32, i32) {
    %c0_i32 = arith.constant 0 : i32
    %c0_i32_0 = arith.constant 0 : i32
    return %arg0, %c0_i32, %arg1 : i32, i32, i32
  }
}

</mosaic_0001>

<bundles_post_ra>
// kernel: tpu_custom_call.1
= control target key start
LH: loop header
LB: loop body
LE: loop exit
PB: predicated region body
PF: predicated region fallthrough
CT: control target
= control target key end

     0   :  { %8 = vsyncpa [#allocation4], 0  ;;  %s789_s0 = inlined_call_operand.hbm [shape: bf16[2,1,8,4,136], index: 0, kind: input, shape index: {}]   ;;  %s790_s1 = inlined_call_operand.vmem [shape: bf16[8,36], index: 1, kind: input, shape index: {}]   ;;  %s791_s2 = inlined_call_operand.vmem [shape: f32[8,1], index: 2, kind: input, shape index: {}]   ;;  %s792_s3 = inlined_call_operand.hbm [shape: f32[2,8,128], index: 3, kind: output, shape index: {}]  }
   0x1   :  { %10 = vsyncpa [#allocation4 + $0x1], 0 }
   0x2   :  { %11 = vsyncpa [#allocation5], 0 }
   0x3   :  { %13 = vsyncpa [#allocation5 + $0x1], 0  ;;  %s654_s12 = smov 0   ;;  %s656_s13 = smov 0  }
   0x4   :  { %s658_s14 = smov 0   ;;  %s660_s15 = smov 0  }
   0x5   :  { %s662_s16 = smov 0   ;;  %s664_s17 = smov 0  }
   0x6 LB: > { %s419_s2 = sadd.s32 4294967295, %s629_s17   ;;  %s420_s18 = sadd.s32 4294967294, %s629_s17   ;;  %s629_s17 = sphi %s664_s17, %s19_s17   ;;  %s625_s16 = sphi %s662_s16, %s801_s16   ;;  %s621_s15 = sphi %s660_s15, %s800_s15   ;;  %s617_s14 = sphi %s658_s14, %s799_s14   ;;  %s613_s13 = sphi %s656_s13, %s798_s13   ;;  %s609_s12 = sphi %s654_s12, %s797_s12  }
   0x7   : > { %s31_s19 = sadd.s32 1, %s625_s16  ;;  %s40_s20 = sadd.s32 1, %s617_s14 }
   0x8   : > { %p33_p0 = scmp.ge.s32.totalorder %s31_s19, 2  ;;  %p47_p1 = scmp.ne.s32.totalorder %s617_s14, %s613_s13 }
   0x9   : > { %p48_p2 = scmp.eq.s32.totalorder %s629_s17, 0  ;;  %p53_p3 = scmp.ne.s32.totalorder %s613_s13, %s609_s12 }
   0xa   : > { %s803_s19 = smov (%p33_p0, %s31_s19), 0  ;;  %p54_p5 = scmp.eq.s32.totalorder %s419_s2, 0 }
   0xb   : > { %p695_p4 = por %p48_p2, %p47_p1  ;;  %s35_s22 = ssub.s32 %s625_s16, %s803_s19 }
   0xc   : > { %p121_p6 = scmp.eq.s32.totalorder %s419_s2, 1  ;;  %p38_p7 = scmp.eq.s32.totalorder %s35_s22, 0 }
   0xd   : > { %p701_p8 = por %p54_p5, %p53_p3  ;;  %p127_p10 = scmp.eq.s32.totalorder %s420_s18, 1 }
   0xe   : > { %p705_p9 = por %p121_p6, %p47_p1  ;;  %p422_p12 = scmp.ge.s32.totalorder %s629_s17, 2 }
   0xf   : > { %s710_s25 = scalar_select %p38_p7, %s617_s14, %s40_s20  }
  0x10   : > { %p712_p11 = por %p127_p10, %p53_p3  ;;  %p464_p13 = scmp.lt.s32.totalorder %s629_s17, 2 }
  0x11   : > { %s153_s27 = sand.u32 1, %s617_s14   ;;  %s449_s29 = sshll.u32 %s625_s16, 5 }
  0x12   : > { %s423_s28 = sshll.u32 %s153_s27, 5  ;;  %s164_s5 = scalar_lea.hbm %s789_s0, %s449_s29 }
  0x13   : > { %s157_s6 = scalar_lea.vmem [#allocation3], %s423_s28  ;;  %s165_s8 = sshll.u32 %s164_s5, 4  ;;  %s166_s8 = int_to_ptr.hbm [resolvable:$true] %s165_s8 }
  0x14   : > { %s167_s7 = sshll.u32 %s157_s6, 4  ;;  %p457_p0 = pnand %p464_p13, %p695_p4  ;;  %s168_s7 = int_to_ptr.vmem [resolvable:$true] %s167_s7 }
  0x15   : > { %p426_p1 = scmp.ge.s32.totalorder %s629_s17, 1  ;;  %s154_s9 = scalar_lea.sflag [#allocation4], %s153_s27 }
  0x16   : > { %s631_s10 = smov 64   ;;  %s632_s11 = smov 4  }
  0x17   : > { %459 = dma.hbm_to_vmem [thread:$0]  (!%p457_p0), %s166_s8, 512, %s168_s7, %s154_s9, %s631_s10, %s631_s10, %s632_s11  }
  0x18   : > { %p175_p2 = scmp.lt.s32.totalorder %s629_s17, 3 }
  0x1a   : > { %p176_p3 = pnand %p426_p1, %p175_p2 }
  0x1b   : > { %s728_s2 = sand.u32 (!%p176_p3), 1, %s613_s13  }
  0x1c   : > { %179 = sbr.rel (%p176_p3) target bundleno = 359 (0x167), region = 32  ;;  %s427_s18 = sshll.u32 (!%p176_p3), %s728_s2, 5 }
  0x1d   : > { %s182_s20 = scalar_lea.sflag (!%p176_p3), [#allocation4], %s728_s2  ;;  %s732_s22 = scalar_lea.vmem (!%p176_p3), [#allocation3], %s427_s18 }
  0x21   : > { %600 = dma.done.wait (%p701_p8), %s182_s20, 512  }
  0x22   : > { %602 = vsyncadd (%p701_p8), %s182_s20, 4294966784  ;;  %v429_v0 = vld [vmem:[%s732_s22 + $0x4] sm:$0x3]  ;;  %v431_v1 = vld [vmem:[%s732_s22 + $0x8] sm:$0x3]  ;;  %s633_s21 = smov 120  }
  0x23   : > { %216 = vst [vmem:[#allocation1 + $0x1] ss:$2 sm:$0xff] %v429_v0  ;;  %v433_v3 = vld [vmem:[%s732_s22 + $0x18] sm:$0x3]  ;;  %v242_v5 = vld [vmem:[%s732_s22] sm:$0xf] }
  0x24   : > { %v434_v7 = vld [vmem:[%s732_s22 + $0x4] sm:$0xf]  ;;  %v435_v9 = vld [vmem:[%s732_s22 + $0x10] sm:$0xf]  ;;  %v432_v12 = vld [vmem:[%s732_s22 + $0xc] sm:$0x3] }
  0x25   : > { %233 = vst [vmem:[#allocation2 + $0x8] sm:$0x3] %v432_v12  ;;  %v210_v13 = vld [vmem:[%s732_s22] sm:$0x3]  ;;  %v430_v14 = vld [vmem:[%s732_s22 + $0x10] sm:$0x3] }
  0x26   : > { %211 = vst [vmem:[#allocation2] sm:$0x3] %v210_v13  ;;  %vm250_vm0 = vcmask 982016   ;;  %vm302_vm1 = vcmask 1041408   ;;  %v277_v30 = vld [vmem:[%s790_s1] sm:$0xf] }
  0x27   : > { %222 = vst [vmem:[#allocation2 + $0x4] sm:$0x3] %v430_v14  ;;  %vm298_vm2 = vcmask 293888   ;;  %s446_s28 = sshll.u32 %s621_s15, 3  ;;  %s428_s29 = sshll.u32 %s728_s2, 3 }
  0x28   : > { %s332_s5 = scalar_lea.hbm %s792_s3, %s446_s28  ;;  %s208_s6 = scalar_lea.vmem [#allocation6], %s428_s29 }
  0x29   : > { %s334_s7 = sshll.u32 %s208_s6, 4  ;;  %s336_s8 = sshll.u32 %s332_s5, 4  ;;  %s335_s7 = int_to_ptr.vmem [resolvable:$true] %s334_s7  ;;  %s337_s8 = int_to_ptr.hbm [resolvable:$true] %s336_s8 }
  0x2a   : > { %v217_v2 = vld.sshfl [vmem:[#allocation1] sm:$0xff pattern:$0x75643120]  ;;  %s321_s9 = scalar_lea.sflag [#allocation5], %s728_s2  ;;  %s561_s10 = sshra.s32 %s337_s8, 4  ;;  %s562_s10 = int_to_ptr.hbm [resolvable:$true] %s561_s10 }
  0x2b   : > { %227 = vst [vmem:[#allocation1 + $0x1] ss:$2 sm:$0xff] %v431_v1  ;;  %s563_s11 = scalar_lea.hbm %s562_s10, 8  ;;  %s567_s20 = scalar_lea.hbm %s792_s3, 16 }
  0x2c   : > { %219 = vst [vmem:[#allocation2] sm:$0xc] %v217_v2  ;;  %p564_p4 = scmp.ne.s32.totalorder %s562_s10, %s563_s11  ;;  %p568_p7 = scmp.lt.s32.totalorder %s562_s10, %s792_s3 }
  0x2d   : > { %p569_p8 = scmp.lt.s32.totalorder %s567_s20, %s563_s11 }
  0x2e   : > { %p565_p5 = pnand %p564_p4, %p705_p9 }
  0x2f   : > { %p570_p10 = por %p569_p8, %p568_p7 }
  0x30   : > { %p566_p6 = pneg %p565_p5 }
  0x32   : > { %v228_v4 = vld.sshfl [vmem:[#allocation1] sm:$0xff pattern:$0x75643120]  ;;  %p571_p13 = pnand %p570_p10, %p566_p6 }
  0x33   : > { %238 = vst [vmem:[#allocation1 + $0x1] ss:$2 sm:$0xff] %v433_v3 }
  0x34   : > { %230 = vst [vmem:[#allocation2 + $0x4] sm:$0xc] %v228_v4 }
  0x3a   : > { %v239_v6 = vld.sshfl [vmem:[#allocation1] sm:$0xff pattern:$0x75643120] }
  0x3b   : > { %244 = vst [vmem:[#allocation1] ss:$2 sm:$0xff] %v242_v5  ;;  %v450_v29 = vld [vmem:[#allocation2] sm:$0xff] }
  0x3c   : > { %241 = vst [vmem:[#allocation2 + $0x8] sm:$0xc] %v239_v6 }
  0x42   : > { %v245_v8 = vld.sshfl [vmem:[#allocation1] sm:$0xff pattern:$0x75643120] }
  0x43   : > { %257 = vst [vmem:[#allocation1 + $0x1] ss:$2 sm:$0xff] %v434_v7 }
  0x4a   : > { %v258_v10 = vld.sshfl [vmem:[#allocation1] sm:$0xff pattern:$0x75643120] }
  0x4b   : > { %268 = vst [vmem:[#allocation1] ss:$2 sm:$0xff] %v435_v9  ;;  %260 = vrot.lane.b32.xlu1 %v258_v10, %s633_s21 }
  0x52   : > { %v269_v11 = vld.sshfl [vmem:[#allocation1] sm:$0xff pattern:$0x75643120] }
  0x53   : > { %271 = vrot.lane.b32.xlu0 %v269_v11, %s633_s21 }
  0x5b   : > { %247 = vrot.lane.b32.xlu0 %v245_v8, %s633_s21 }
  0xbd   : > { %v261_v15 = vpop.permute.xlu1 %260 }
  0xbe   : > { %v262_v16 = vrot.slane %v261_v15, 4 }
  0xc0   : > { %v263_v17 = vsel %vm250_vm0, %v261_v15, %v262_v16 }
  0xc1   : > { %265 = vst [vmem:[#allocation2 + $0xc] sm:$0xc] %v263_v17 }
  0xc5   : > { %v272_v18 = vpop.permute.xlu0 %271 }
  0xc6   : > { %v273_v19 = vrot.slane %v272_v18, 4 }
  0xc8   : > { %v274_v20 = vsel %vm250_vm0, %v272_v18, %v273_v19 }
  0xc9   : > { %276 = vst [vmem:[#allocation2 + $0x10] sm:$0x3] %v274_v20 }
  0xcd   : > { %v248_v21 = vpop.permute.xlu0 %247 }
  0xce   : > { %v249_v22 = vrot.slane %v248_v21, 4 }
  0xd0   : > { %v251_v23 = vsel %vm250_vm0, %v248_v21, %v249_v22  ;;  %v282_v24 = vld [vmem:[#allocation2 + $0x10] sm:$0x3] }
  0xd1   : > { %253 = vst [vmem:[#allocation2 + $0xc] sm:$0x3] %v251_v23  ;;  %v292_v25 = vunpack.c.l.b16 %v282_v24 }
  0xd3   : > { %v295_v26 = vpack.c.b16 %v292_v25, %v292_v25 }
  0xd5   : > { %v304_v27 = vsel %vm302_vm1, %v295_v26, 0 }
  0xd6   : > { %311 = vmatpush.bf16.msra.mxu0 %v304_v27 }
  0xd8   : > { %v451_v28 = vld [vmem:[#allocation2 + $0x8] sm:$0xff] }
  0xda   : > { %312 = vmatpush.bf16.msra.mxu0 %v451_v28 }
  0xde   : > { %313 = vmatpush.bf16.msra.mxu0 %v450_v29 }
  0xe1   : > { %444 = vmatmul.msk.bf16.vlgmr.msra.gmra.mxu0 %vm298_vm2, %v277_v30 }
 0x15e   : > { %v315_v31 = vpop.f32.mrf.mxu0 }
 0x15f   : > { %319 = vst [vmem:[%s208_s6] sm:$0xff] %v315_v31 }
 0x160   : > { %574 = shalt.err (!%p571_p13)
}
 0x161   : > { %454 = dma.vmem_to_hbm [thread:$0]  (%p705_p9), %s335_s7, 128, %s337_s8, %s321_s9  }
 0x166   : > { %v317_v32 = vpop.f32.mrf.mxu0 }
 0x167 PF: > { %s348_s2 = sand.u32 1, %s609_s12   ;;  %p461_p0 = pnand %p422_p12, %p712_p11 }
 0x168   : > { %s349_s23 = scalar_lea.sflag [#allocation5], %s348_s2 }
 0x169   : > { %p462_p1 = pneg %p461_p0 }
 0x16b   : > { %604 = dma.done.wait (%p462_p1), %s349_s23, 128  }
 0x16c   : > { %606 = vsyncadd (%p462_p1), %s349_s23, 4294967168  ;;  %s19_s17 = sadd.s32 1, %s629_s17   ;;  %s797_s12 = smov %s613_s13 }
 0x16d   : > { %p16_p2 = scmp.ge.s32.totalorder %s19_s17, 4   ;;  %s798_s13 = smov %s617_s14 }
 0x16e   : > { %s799_s14 = smov %s710_s25  ;;  %s800_s15 = smov %s625_s16 }
 0x16f   : > { %s801_s16 = smov %s803_s19  ;;  %18 = sbr.rel (!%p16_p2) target bundleno = 6 (0x6), region = 86 }
 0x174   :  { %355 = vsyncpa [#allocation4], 1 }
 0x175   :  { %357 = vsyncpa [#allocation4 + $0x1], 1 }
 0x176   :  { %358 = vsyncpa [#allocation5], 1 }
 0x177   :  { %360 = vsyncpa [#allocation5 + $0x1], 1 }

</bundles_post_ra>
